<compile_context>
chip_gen: v6e
topology: v6e:2x2x1
jax: 0.10.0
libtpu: 0.0.40
codegen_flags: <defaults>
</compile_context>

<pallas_src>
import functools

import jax
import jax.numpy as jnp
from jax.experimental import pallas as pl
from jax.experimental.pallas import tpu as pltpu


def _round_up(n, m):
    return ((n + m - 1) // m) * m


def _pick_tile(n_pad, *, max_tile, min_steps):
    """Largest multiple of 128 that divides n_pad, is <= max_tile and leaves at
    least `min_steps` grid steps along that axis (falls back to 128)."""
    best = 128
    t = 128
    limit = min(max_tile, n_pad)
    while t <= limit:
        if n_pad % t == 0 and n_pad // t >= min_steps:
            best = t
        t += 128
    return best


# ----------------------------------------------------------------------------
# Fused GCNConv kernel:  out = A_norm @ (X @ W) + b   (+ optional ReLU)
#   grid = (row_tiles, K_tiles); K (reduction) is last ("arbitrary"),
#   output block is constant across K -> f32 VMEM accumulator semantics.
#   The feature transform for the current K block is recomputed per row tile;
#   the kernel is HBM-bound on the A stream so the extra MXU work hides.
#   NOTE: no pl.when(i == 0) gating anywhere -> megacore-safe on v7x.
# ----------------------------------------------------------------------------
def _fused_gcn_kernel(a_ref, x_ref, w_ref, b_ref, o_ref, acc_ref, *, apply_relu):
    k = pl.program_id(1)

    @pl.when(k == 0)
    def _():
        acc_ref[...] = jnp.zeros_like(acc_ref)

    xw = jnp.dot(
        x_ref[...], w_ref[...], preferred_element_type=jnp.float32
    ).astype(jnp.bfloat16)
    acc_ref[...] += jnp.dot(a_ref[...], xw, preferred_element_type=jnp.float32)

    @pl.when(k == pl.num_programs(1) - 1)
    def _():
        out = acc_ref[...] + b_ref[...]          # bias only in finalize phase
        if apply_relu:
            out = jnp.maximum(out, 0.0)
        o_ref[...] = out.astype(o_ref.dtype)


def gcn_conv_layer(a_pad, x_pad, w_pad, b_pad, *, apply_relu, tm, tk,
                   out_dtype=jnp.bfloat16):
    """One fused GCNConv layer on padded bf16 operands."""
    n_pad = a_pad.shape[0]
    c_in_p = x_pad.shape[1]
    c_out_p = w_pad.shape[1]
    assert n_pad % tm == 0 and n_pad % tk == 0, (n_pad, tm, tk)

    kernel = functools.partial(_fused_gcn_kernel, apply_relu=apply_relu)

    row_tiles = n_pad // tm
    out_itemsize = jnp.dtype(out_dtype).itemsize
    flops = (2 * n_pad * n_pad * c_out_p                      # aggregation
             + 2 * row_tiles * n_pad * c_in_p * c_out_p)      # XW recompute
    bytes_accessed = (
        n_pad * n_pad * 2                      # A (bf16), read once
        + row_tiles * n_pad * c_in_p * 2       # X, re-read per row tile
        + c_in_p * c_out_p * 2                 # W (VMEM resident)
        + c_out_p * 4                          # bias
        + n_pad * c_out_p * out_itemsize       # output
    )
    # Double-buffered inputs/output + f32 accumulator, 4x headroom, <= 32 MiB.
    vmem_bytes = (
        2 * (tm * tk * 2 + tk * c_in_p * 2 + c_in_p * c_out_p * 2
             + c_out_p * 4 + tm * c_out_p * out_itemsize)
        + tm * c_out_p * 4
    )
    vmem_limit = min(max(4 * vmem_bytes, 16 * 1024 * 1024), 32 * 1024 * 1024)

    return pl.pallas_call(
        kernel,
        out_shape=jax.ShapeDtypeStruct((n_pad, c_out_p), out_dtype),
        grid_spec=pltpu.PrefetchScalarGridSpec(
            num_scalar_prefetch=0,
            grid=(row_tiles, n_pad // tk),
            in_specs=[
                pl.BlockSpec((tm, tk), lambda i, k: (i, k)),           # A tile
                pl.BlockSpec((tk, c_in_p), lambda i, k: (k, 0)),       # X block
                pl.BlockSpec((c_in_p, c_out_p), lambda i, k: (0, 0)),  # W
                pl.BlockSpec((1, c_out_p), lambda i, k: (0, 0)),       # bias
            ],
            out_specs=pl.BlockSpec((tm, c_out_p), lambda i, k: (i, 0)),
            scratch_shapes=[pltpu.VMEM((tm, c_out_p), jnp.float32)],
        ),
        compiler_params=pltpu.CompilerParams(
            dimension_semantics=("parallel", "arbitrary"),
            vmem_limit_bytes=vmem_limit,
        ),
        cost_estimate=pl.CostEstimate(
            flops=flops, transcendentals=0, bytes_accessed=bytes_accessed
        ),
    )(a_pad, x_pad, w_pad, b_pad)


# ----------------------------------------------------------------------------
# Adjacency construction (hoisted out of the jitted forward; static graph).
# Matches torch_geometric gcn_norm with add_self_loops=True:
#   A_norm[t, s] = deg^{-1/2}[t] * deg^{-1/2}[s],  deg[t] = in-degree + fill
# Built directly at padded size in bf16 (no f32 N^2 intermediate).
# ----------------------------------------------------------------------------
def build_norm_adj_padded(edge_index, num_nodes, n_pad, improved=False,
                          dtype=jnp.bfloat16):
    row, col = edge_index[0], edge_index[1]          # source, target
    fill = 2.0 if improved else 1.0
    deg = jnp.zeros((num_nodes,), jnp.float32).at[col].add(1.0) + fill
    dis = jax.lax.rsqrt(deg)
    edge_w = (dis[col] * dis[row]).astype(dtype)     # A[target, source]
    diag_w = (fill * dis * dis).astype(dtype)
    idx = jnp.arange(num_nodes)
    adj = jnp.zeros((n_pad, n_pad), dtype)
    adj = adj.at[col, row].add(edge_w)
    adj = adj.at[idx, idx].add(diag_w)
    return adj


def build_norm_adj_f32(edge_index, num_nodes, improved=False):
    """Plain f32 reference (only used for the correctness check)."""
    row, col = edge_index[0], edge_index[1]
    adj = jnp.zeros((num_nodes, num_nodes), jnp.float32).at[col, row].add(1.0)
    adj = adj + (2.0 if improved else 1.0) * jnp.eye(num_nodes, dtype=jnp.float32)
    deg = adj.sum(axis=1)
    dis = jnp.where(deg > 0, 1.0 / jnp.sqrt(deg), 0.0)
    return dis[:, None] * adj * dis[None, :]


# ----------------------------------------------------------------------------
# GCN model: conv1 -> relu -> dropout(identity, eval) -> conv2
# ----------------------------------------------------------------------------
def glorot(key, shape):
    fan_in, fan_out = shape
    limit = jnp.sqrt(6.0 / (fan_in + fan_out))
    return jax.random.uniform(key, shape, jnp.float32, -limit, limit)


def init_gcn_params(key, in_channels, hidden_channels, out_channels):
    k1, k2 = jax.random.split(key)
    return {
        "w1": glorot(k1, (in_channels, hidden_channels)),
        "b1": jnp.zeros((hidden_channels,), jnp.float32),
        "w2": glorot(k2, (hidden_channels, out_channels)),
        "b2": jnp.zeros((out_channels,), jnp.float32),
    }


def gcn_forward(params, x, a_pad):
    n, c_in = x.shape
    n_pad = a_pad.shape[0]
    hid = params["w1"].shape[1]
    c_out = params["w2"].shape[1]

    c_in_p = _round_up(c_in, 128)
    hid_p = _round_up(hid, 128)
    c_out_p = _round_up(c_out, 128)

    # Row tile: aim for >= 4 row tiles so each v7x core keeps its software
    # pipeline in steady state; K tile: as wide as fits (fewer grid steps,
    # bigger contiguous A DMAs). Both must divide n_pad.
    tm = _pick_tile(n_pad, max_tile=512, min_steps=4)
    tk = _pick_tile(n_pad, max_tile=512, min_steps=1)

    # Pad channels to the 128-lane width (lane-dense, unmasked stores) and
    # nodes to n_pad; padded rows/cols are zero so they contribute nothing.
    x_pad = (jnp.zeros((n_pad, c_in_p), jnp.bfloat16)
             .at[:n, :c_in].set(x.astype(jnp.bfloat16)))
    w1 = (jnp.zeros((c_in_p, hid_p), jnp.bfloat16)
          .at[:c_in, :hid].set(params["w1"].astype(jnp.bfloat16)))
    b1 = jnp.zeros((1, hid_p), jnp.float32).at[0, :hid].set(params["b1"])
    w2 = (jnp.zeros((hid_p, c_out_p), jnp.bfloat16)
          .at[:hid, :c_out].set(params["w2"].astype(jnp.bfloat16)))
    b2 = jnp.zeros((1, c_out_p), jnp.float32).at[0, :c_out].set(params["b2"])

    # conv1 + ReLU (bf16 output: it is the bf16 X operand of conv2)
    h = gcn_conv_layer(a_pad, x_pad, w1, b1, apply_relu=True, tm=tm, tk=tk)
    # F.dropout(training=False) -> identity (inference mode)
    out = gcn_conv_layer(a_pad, h, w2, b2, apply_relu=False, tm=tm, tk=tk)
    # bf16 lane-dense writeback in the kernel; slice + upcast outside.
    return out[:n, :c_out].astype(jnp.float32)


if __name__ == "__main__":
    key = jax.random.PRNGKey(0)
    k_x, k_e, k_p = jax.random.split(key, 3)

    num_nodes = 300                      # pads to 384 -> 3 row tiles of 128
    in_channels, hidden_channels, out_channels = 16, 32, 8
    num_edges = 600

    x = jax.random.normal(k_x, (num_nodes, in_channels), jnp.float32)
    src = jax.random.randint(k_e, (num_edges,), 0, num_nodes)
    dst = jax.random.randint(jax.random.fold_in(k_e, 1), (num_edges,), 0, num_nodes)
    # make the graph undirected (typical GCN usage)
    edge_index = jnp.stack(
        [jnp.concatenate([src, dst]), jnp.concatenate([dst, src])], axis=0
    ).astype(jnp.int32)

    params = init_gcn_params(k_p, in_channels, hidden_channels, out_channels)

    # Static graph: build the padded bf16 normalized adjacency ONCE, outside
    # the jitted per-call path.
    n_pad = _round_up(num_nodes, 128)
    a_pad = jax.block_until_ready(
        build_norm_adj_padded(edge_index, num_nodes, n_pad, improved=False))

    fwd = jax.jit(gcn_forward)
    out = fwd(params, x, a_pad)
    jax.block_until_ready(out)
    assert out.shape == (num_nodes, out_channels)

    # Loose plain-JAX f32 sanity check (kernel uses bf16 operands/outputs,
    # f32 accumulation).
    a_ref = build_norm_adj_f32(edge_index, num_nodes)
    h_ref = jnp.maximum(a_ref @ (x @ params["w1"]) + params["b1"], 0.0)
    ref = a_ref @ (h_ref @ params["w2"]) + params["b2"]
    err = float(jnp.max(jnp.abs(out - ref)))
    scale = float(jnp.max(jnp.abs(ref))) + 1.0
    assert err < 0.1 * scale, (err, scale)

    print("KERNEL_OK")
</pallas_src>

<mosaic_0001>
module attributes {stable_mosaic.version = 11 : i64} {
  func.func @_fused_gcn_kernel(%arg0: i32, %arg1: i32, %arg2: memref<128x384xbf16, #tpu.memory_space<vmem>>, %arg3: memref<384x128xbf16, #tpu.memory_space<vmem>>, %arg4: memref<128x128xbf16, #tpu.memory_space<vmem>>, %arg5: memref<1x128xf32, #tpu.memory_space<vmem>>, %arg6: memref<128x128xbf16, #tpu.memory_space<vmem>>, %arg7: memref<128x128xf32, #tpu.memory_space<vmem>>) attributes {dimension_semantics = [#tpu.dimension_semantics<parallel>, #tpu.dimension_semantics<arbitrary>], iteration_bounds = array<i64: 3, 1>, scalar_prefetch = 0 : i64, scratch_operands = 1 : i64, tpu.core_type = #tpu.core_type<tc>, window_params = [{transform_indices = @transform_0, window_bounds = array<i64: 128, 384>}, {transform_indices = @transform_1, window_bounds = array<i64: 384, 128>}, {pipeline_mode = #tpu.pipeline_mode<synchronous>, transform_indices = @transform_2, window_bounds = array<i64: 128, 128>}, {pipeline_mode = #tpu.pipeline_mode<synchronous>, transform_indices = @transform_3, window_bounds = array<i64: 1, 128>}, {transform_indices = @transform_4, window_bounds = array<i64: 128, 128>}]} {
    %c0_i32 = arith.constant 0 : i32
    %0 = arith.cmpi eq, %arg1, %c0_i32 : i32
    %1 = arith.extui %0 : i1 to i32
    %c0_i32_0 = arith.constant 0 : i32
    %2 = arith.cmpi ne, %1, %c0_i32_0 : i32
    scf.if %2 {
      %cst_13 = arith.constant 0.000000e+00 : f32
      %15 = vector.broadcast %cst_13 : f32 to vector<128x128xf32>
      %c0_14 = arith.constant 0 : index
      %c0_15 = arith.constant 0 : index
      %16 = vector.load %arg7[%c0_14, %c0_15] : memref<128x128xf32, #tpu.memory_space<vmem>>, vector<128x128xf32>
      tpu.vector_store %arg7[%c0_14, %c0_15], %15 {strides = array<i32>} : memref<128x128xf32, #tpu.memory_space<vmem>>, vector<128x128xf32>,
    } else {
    }
    %c0 = arith.constant 0 : index
    %c0_1 = arith.constant 0 : index
    %3 = vector.load %arg3[%c0, %c0_1] : memref<384x128xbf16, #tpu.memory_space<vmem>>, vector<384x128xbf16>
    %c0_2 = arith.constant 0 : index
    %c0_3 = arith.constant 0 : index
    %4 = vector.load %arg4[%c0_2, %c0_3] : memref<128x128xbf16, #tpu.memory_space<vmem>>, vector<128x128xbf16>
    %cst = arith.constant dense<0.000000e+00> : vector<384x128xf32>
    %5 = tpu.matmul %3, %4, %cst {dimension_numbers = #tpu.dot_dimension_numbers<[1], [0], [0], [1], [0, 0, 1, 1], [], []>} : vector<384x128xbf16>, vector<128x128xbf16>, vector<384x128xf32> -> vector<384x128xf32>
    %6 = arith.truncf %5 : vector<384x128xf32> to vector<384x128xbf16>
    %c0_4 = arith.constant 0 : index
    %c0_5 = arith.constant 0 : index
    %7 = vector.load %arg7[%c0_4, %c0_5] : memref<128x128xf32, #tpu.memory_space<vmem>>, vector<128x128xf32>
    %c0_6 = arith.constant 0 : index
    %c0_7 = arith.constant 0 : index
    %8 = vector.load %arg2[%c0_6, %c0_7] : memref<128x384xbf16, #tpu.memory_space<vmem>>, vector<128x384xbf16>
    %cst_8 = arith.constant dense<0.000000e+00> : vector<128x128xf32>
    %9 = tpu.matmul %8, %6, %cst_8 {dimension_numbers = #tpu.dot_dimension_numbers<[1], [0], [0], [1], [0, 0, 1, 1], [], []>} : vector<128x384xbf16>, vector<384x128xbf16>, vector<128x128xf32> -> vector<128x128xf32>
    %10 = arith.addf %7, %9 : vector<128x128xf32>
    %c0_9 = arith.constant 0 : index
    %c0_10 = arith.constant 0 : index
    %11 = vector.load %arg7[%c0_9, %c0_10] : memref<128x128xf32, #tpu.memory_space<vmem>>, vector<128x128xf32>
    tpu.vector_store %arg7[%c0_9, %c0_10], %10 {strides = array<i32>} : memref<128x128xf32, #tpu.memory_space<vmem>>, vector<128x128xf32>,
    %c0_i32_11 = arith.constant 0 : i32
    %12 = arith.cmpi eq, %arg1, %c0_i32_11 : i32
    %13 = arith.extui %12 : i1 to i32
    %c0_i32_12 = arith.constant 0 : i32
    %14 = arith.cmpi ne, %13, %c0_i32_12 : i32
    scf.if %14 {
      %c0_13 = arith.constant 0 : index
      %c0_14 = arith.constant 0 : index
      %15 = vector.load %arg7[%c0_13, %c0_14] : memref<128x128xf32, #tpu.memory_space<vmem>>, vector<128x128xf32>
      %c0_15 = arith.constant 0 : index
      %c0_16 = arith.constant 0 : index
      %16 = vector.load %arg5[%c0_15, %c0_16] : memref<1x128xf32, #tpu.memory_space<vmem>>, vector<1x128xf32>
      %17 = vector.broadcast %16 : vector<1x128xf32> to vector<128x128xf32>
      %18 = arith.addf %15, %17 : vector<128x128xf32>
      %cst_17 = arith.constant 0.000000e+00 : f32
      %19 = vector.broadcast %cst_17 : f32 to vector<128x128xf32>
      %20 = arith.maximumf %18, %19 : vector<128x128xf32>
      %21 = arith.truncf %20 : vector<128x128xf32> to vector<128x128xbf16>
      %c0_18 = arith.constant 0 : index
      %c0_19 = arith.constant 0 : index
      %22 = vector.load %arg6[%c0_18, %c0_19] : memref<128x128xbf16, #tpu.memory_space<vmem>>, vector<128x128xbf16>
      tpu.vector_store %arg6[%c0_18, %c0_19], %21 {strides = array<i32>} : memref<128x128xbf16, #tpu.memory_space<vmem>>, vector<128x128xbf16>,
    } else {
    }
    return
  }
  func.func @transform_0(%arg0: i32, %arg1: i32) -> (i32, i32) {
    %c0_i32 = arith.constant 0 : i32
    return %arg0, %arg1 : i32, i32
  }
  func.func @transform_1(%arg0: i32, %arg1: i32) -> (i32, i32) {
    %c0_i32 = arith.constant 0 : i32
    %c0_i32_0 = arith.constant 0 : i32
    return %arg1, %c0_i32 : i32, i32
  }
  func.func @transform_2(%arg0: i32, %arg1: i32) -> (i32, i32) {
    %c0_i32 = arith.constant 0 : i32
    %c0_i32_0 = arith.constant 0 : i32
    %c0_i32_1 = arith.constant 0 : i32
    return %c0_i32, %c0_i32_0 : i32, i32
  }
  func.func @transform_3(%arg0: i32, %arg1: i32) -> (i32, i32) {
    %c0_i32 = arith.constant 0 : i32
    %c0_i32_0 = arith.constant 0 : i32
    %c0_i32_1 = arith.constant 0 : i32
    return %c0_i32, %c0_i32_0 : i32, i32
  }
  func.func @transform_4(%arg0: i32, %arg1: i32) -> (i32, i32) {
    %c0_i32 = arith.constant 0 : i32
    %c0_i32_0 = arith.constant 0 : i32
    return %arg0, %c0_i32 : i32, i32
  }
}

module attributes {stable_mosaic.version = 11 : i64} {
  func.func @_fused_gcn_kernel(%arg0: i32, %arg1: i32, %arg2: memref<128x384xbf16, #tpu.memory_space<vmem>>, %arg3: memref<384x128xbf16, #tpu.memory_space<vmem>>, %arg4: memref<128x128xbf16, #tpu.memory_space<vmem>>, %arg5: memref<1x128xf32, #tpu.memory_space<vmem>>, %arg6: memref<128x128xbf16, #tpu.memory_space<vmem>>, %arg7: memref<128x128xf32, #tpu.memory_space<vmem>>) attributes {dimension_semantics = [#tpu.dimension_semantics<parallel>, #tpu.dimension_semantics<arbitrary>], iteration_bounds = array<i64: 3, 1>, scalar_prefetch = 0 : i64, scratch_operands = 1 : i64, tpu.core_type = #tpu.core_type<tc>, window_params = [{transform_indices = @transform_0, window_bounds = array<i64: 128, 384>}, {transform_indices = @transform_1, window_bounds = array<i64: 384, 128>}, {pipeline_mode = #tpu.pipeline_mode<synchronous>, transform_indices = @transform_2, window_bounds = array<i64: 128, 128>}, {pipeline_mode = #tpu.pipeline_mode<synchronous>, transform_indices = @transform_3, window_bounds = array<i64: 1, 128>}, {transform_indices = @transform_4, window_bounds = array<i64: 128, 128>}]} {
    %c0_i32 = arith.constant 0 : i32
    %0 = arith.cmpi eq, %arg1, %c0_i32 : i32
    %1 = arith.extui %0 : i1 to i32
    %c0_i32_0 = arith.constant 0 : i32
    %2 = arith.cmpi ne, %1, %c0_i32_0 : i32
    scf.if %2 {
      %cst_13 = arith.constant 0.000000e+00 : f32
      %15 = vector.broadcast %cst_13 : f32 to vector<128x128xf32>
      %c0_14 = arith.constant 0 : index
      %c0_15 = arith.constant 0 : index
      %16 = vector.load %arg7[%c0_14, %c0_15] : memref<128x128xf32, #tpu.memory_space<vmem>>, vector<128x128xf32>
      tpu.vector_store %arg7[%c0_14, %c0_15], %15 {strides = array<i32>} : memref<128x128xf32, #tpu.memory_space<vmem>>, vector<128x128xf32>,
    } else {
    }
    %c0 = arith.constant 0 : index
    %c0_1 = arith.constant 0 : index
    %3 = vector.load %arg3[%c0, %c0_1] : memref<384x128xbf16, #tpu.memory_space<vmem>>, vector<384x128xbf16>
    %c0_2 = arith.constant 0 : index
    %c0_3 = arith.constant 0 : index
    %4 = vector.load %arg4[%c0_2, %c0_3] : memref<128x128xbf16, #tpu.memory_space<vmem>>, vector<128x128xbf16>
    %cst = arith.constant dense<0.000000e+00> : vector<384x128xf32>
    %5 = tpu.matmul %3, %4, %cst {dimension_numbers = #tpu.dot_dimension_numbers<[1], [0], [0], [1], [0, 0, 1, 1], [], []>} : vector<384x128xbf16>, vector<128x128xbf16>, vector<384x128xf32> -> vector<384x128xf32>
    %6 = arith.truncf %5 : vector<384x128xf32> to vector<384x128xbf16>
    %c0_4 = arith.constant 0 : index
    %c0_5 = arith.constant 0 : index
    %7 = vector.load %arg7[%c0_4, %c0_5] : memref<128x128xf32, #tpu.memory_space<vmem>>, vector<128x128xf32>
    %c0_6 = arith.constant 0 : index
    %c0_7 = arith.constant 0 : index
    %8 = vector.load %arg2[%c0_6, %c0_7] : memref<128x384xbf16, #tpu.memory_space<vmem>>, vector<128x384xbf16>
    %cst_8 = arith.constant dense<0.000000e+00> : vector<128x128xf32>
    %9 = tpu.matmul %8, %6, %cst_8 {dimension_numbers = #tpu.dot_dimension_numbers<[1], [0], [0], [1], [0, 0, 1, 1], [], []>} : vector<128x384xbf16>, vector<384x128xbf16>, vector<128x128xf32> -> vector<128x128xf32>
    %10 = arith.addf %7, %9 : vector<128x128xf32>
    %c0_9 = arith.constant 0 : index
    %c0_10 = arith.constant 0 : index
    %11 = vector.load %arg7[%c0_9, %c0_10] : memref<128x128xf32, #tpu.memory_space<vmem>>, vector<128x128xf32>
    tpu.vector_store %arg7[%c0_9, %c0_10], %10 {strides = array<i32>} : memref<128x128xf32, #tpu.memory_space<vmem>>, vector<128x128xf32>,
    %c0_i32_11 = arith.constant 0 : i32
    %12 = arith.cmpi eq, %arg1, %c0_i32_11 : i32
    %13 = arith.extui %12 : i1 to i32
    %c0_i32_12 = arith.constant 0 : i32
    %14 = arith.cmpi ne, %13, %c0_i32_12 : i32
    scf.if %14 {
      %c0_13 = arith.constant 0 : index
      %c0_14 = arith.constant 0 : index
      %15 = vector.load %arg7[%c0_13, %c0_14] : memref<128x128xf32, #tpu.memory_space<vmem>>, vector<128x128xf32>
      %c0_15 = arith.constant 0 : index
      %c0_16 = arith.constant 0 : index
      %16 = vector.load %arg5[%c0_15, %c0_16] : memref<1x128xf32, #tpu.memory_space<vmem>>, vector<1x128xf32>
      %17 = vector.broadcast %16 : vector<1x128xf32> to vector<128x128xf32>
      %18 = arith.addf %15, %17 : vector<128x128xf32>
      %19 = arith.truncf %18 : vector<128x128xf32> to vector<128x128xbf16>
      %c0_17 = arith.constant 0 : index
      %c0_18 = arith.constant 0 : index
      %20 = vector.load %arg6[%c0_17, %c0_18] : memref<128x128xbf16, #tpu.memory_space<vmem>>, vector<128x128xbf16>
      tpu.vector_store %arg6[%c0_17, %c0_18], %19 {strides = array<i32>} : memref<128x128xbf16, #tpu.memory_space<vmem>>, vector<128x128xbf16>,
    } else {
    }
    return
  }
  func.func @transform_0(%arg0: i32, %arg1: i32) -> (i32, i32) {
    %c0_i32 = arith.constant 0 : i32
    return %arg0, %arg1 : i32, i32
  }
  func.func @transform_1(%arg0: i32, %arg1: i32) -> (i32, i32) {
    %c0_i32 = arith.constant 0 : i32
    %c0_i32_0 = arith.constant 0 : i32
    return %arg1, %c0_i32 : i32, i32
  }
  func.func @transform_2(%arg0: i32, %arg1: i32) -> (i32, i32) {
    %c0_i32 = arith.constant 0 : i32
    %c0_i32_0 = arith.constant 0 : i32
    %c0_i32_1 = arith.constant 0 : i32
    return %c0_i32, %c0_i32_0 : i32, i32
  }
  func.func @transform_3(%arg0: i32, %arg1: i32) -> (i32, i32) {
    %c0_i32 = arith.constant 0 : i32
    %c0_i32_0 = arith.constant 0 : i32
    %c0_i32_1 = arith.constant 0 : i32
    return %c0_i32, %c0_i32_0 : i32, i32
  }
  func.func @transform_4(%arg0: i32, %arg1: i32) -> (i32, i32) {
    %c0_i32 = arith.constant 0 : i32
    %c0_i32_0 = arith.constant 0 : i32
    return %arg0, %c0_i32 : i32, i32
  }
}

</mosaic_0001>

<bundles_post_ra>
// kernel: gcn_forward.3
= control target key start
LH: loop header
LB: loop body
LE: loop exit
PB: predicated region body
PF: predicated region fallthrough
CT: control target
= control target key end

     0   :  { %s1884_s15 = smov 0   ;;  %s1886_s16 = smov 0   ;;  %s2125_s0 = inlined_call_operand.vmem [shape: bf16[384,384], index: 0, kind: input, shape index: {}]   ;;  %s2126_s1 = inlined_call_operand.vmem [shape: bf16[384,128], index: 1, kind: input, shape index: {}]   ;;  %s2127_s2 = inlined_call_operand.vmem [shape: bf16[128,128], index: 2, kind: input, shape index: {}]   ;;  %s2128_s3 = inlined_call_operand.vmem [shape: f32[1,128], index: 3, kind: input, shape index: {}]   ;;  %s2129_s4 = inlined_call_operand.vmem [shape: bf16[384,128], index: 4, kind: output, shape index: {}]  }
   0x1   :  { %s1888_s17 = smov 0  }
   0x2 LB: > { %s26_s18 = sadd.s32 1, %s1853_s16  ;;  %p1395_p0 = scmp.ge.s32.totalorder %s1857_s17, 1  ;;  %s1857_s17 = sphi %s1888_s17, %s14_s17   ;;  %s1853_s16 = sphi %s1886_s16, %s2131_s16   ;;  %s1849_s15 = sphi %s1884_s15, %s2130_s15  }
   0x3   : > { %p28_p1 = scmp.ge.s32.totalorder %s26_s18, 3  ;;  %p194_p2 = scmp.lt.s32.totalorder %s1857_s17, 4 }
   0x5   : > { %s2133_s18 = smov (%p28_p1, %s26_s18), 0  ;;  %p195_p3 = pnand %p1395_p0, %p194_p2 }
   0x6   : > { %s1396_s13 = sshll.u32 (!%p195_p3), %s1849_s15, 4 }
   0x7   : > { %198 = sbr.rel (%p195_p3) target bundleno = 626 (0x272), region = 36  ;;  %p232_p4 = scmp.lt.s32.totalorder (!%p195_p3), %s1396_s13, 47 }
   0xc   : > { %v1771_v0 = vld [vmem:[%s2127_s2 + $0x38] sm:$0xff]   ;;  %v1772_v1 = vld [vmem:[%s2127_s2 + $0x30] sm:$0xff]   ;;  %v1773_v2 = vld [vmem:[%s2127_s2 + $0x28] sm:$0xff]   ;;  %s2135_s13 = smov (!%p232_p4, %s1396_s13), 47 }
   0xd   : > { %1650 = vmatprep.subr.bf16.mxu0 %v1771_v0  ;;  %v1774_v3 = vld [vmem:[%s2127_s2 + $0x20] sm:$0xff]   ;;  %v1775_v5 = vld [vmem:[%s2127_s2 + $0x18] sm:$0xff]   ;;  %v1776_v6 = vld [vmem:[%s2127_s2 + $0x10] sm:$0xff]   ;;  %s1746_s14 = smul.u32 12, %s2135_s13  ;;  %s1399_s23 = sshll.u32 %s2135_s13, 2 }
   0xe   : > { %1651 = vmatpush3.bf16.msra.mxu0 %v1771_v0  ;;  %v1779_v4 = vld [vmem:[%s2126_s1] sm:$0xff]   ;;  %v1777_v7 = vld [vmem:[%s2127_s2 + $0x8] sm:$0xff]   ;;  %v1781_v10 = vld [vmem:[%s2126_s1 + $0x10] sm:$0xff]   ;;  %s2086_s26 = scalar_lea.vmem %s2129_s4, %s1399_s23 }
   0xf   : > { %1652 = vmatprep.subr.bf16.mxu0 %v1772_v1  ;;  %1666 = vmatprep.mubr.bf16.mxu0 %v1779_v4  ;;  %v1778_v8 = vld [vmem:[%s2127_s2] sm:$0xff]   ;;  %v1780_v9 = vld [vmem:[%s2126_s1 + $0x8] sm:$0xff]   ;;  %v1782_v11 = vld [vmem:[%s2126_s1 + $0x18] sm:$0xff]   ;;  %s2007_s21 = scalar_lea.vmem %s2125_s0, %s1746_s14 }
  0x10   : > { %v1783_v12 = vld [vmem:[%s2126_s1 + $0x20] sm:$0xff]   ;;  %v1784_v13 = vld [vmem:[%s2126_s1 + $0x28] sm:$0xff]   ;;  %v1785_v14 = vld [vmem:[%s2126_s1 + $0x30] sm:$0xff]  }
  0x11   : > { %v1786_v15 = vld [vmem:[%s2126_s1 + $0x38] sm:$0xff]   ;;  %v1787_v16 = vld [vmem:[%s2126_s1 + $0x40] sm:$0xff]   ;;  %v1788_v17 = vld [vmem:[%s2126_s1 + $0x48] sm:$0xff]  }
  0x12   : > { %1653 = vmatpush3.bf16.msra.mxu0 %v1772_v1  ;;  %v1789_v18 = vld [vmem:[%s2126_s1 + $0x50] sm:$0xff]   ;;  %v1790_v19 = vld [vmem:[%s2126_s1 + $0x58] sm:$0xff]   ;;  %v1791_v20 = vld [vmem:[%s2126_s1 + $0x60] sm:$0xff]  }
  0x13   : > { %1654 = vmatprep.subr.bf16.mxu0 %v1773_v2  ;;  %v1792_v21 = vld [vmem:[%s2126_s1 + $0x68] sm:$0xff]   ;;  %v1793_v22 = vld [vmem:[%s2126_s1 + $0x70] sm:$0xff]   ;;  %v1794_v23 = vld [vmem:[%s2126_s1 + $0x78] sm:$0xff]  }
  0x14   : > { %v1795_v24 = vld [vmem:[%s2126_s1 + $0x80] sm:$0xff]   ;;  %v1796_v25 = vld [vmem:[%s2126_s1 + $0x88] sm:$0xff]   ;;  %v1797_v26 = vld [vmem:[%s2126_s1 + $0x90] sm:$0xff]  }
  0x15   : > { %v1798_v27 = vld [vmem:[%s2126_s1 + $0x98] sm:$0xff]   ;;  %v1799_v28 = vld [vmem:[%s2126_s1 + $0xa0] sm:$0xff]   ;;  %v1800_v29 = vld [vmem:[%s2126_s1 + $0xa8] sm:$0xff]  }
  0x16   : > { %1655 = vmatpush3.bf16.msra.mxu0 %v1773_v2  ;;  %v1801_v30 = vld [vmem:[%s2126_s1 + $0xb0] sm:$0xff]   ;;  %v1802_v31 = vld [vmem:[%s2126_s1 + $0xb8] sm:$0xff]  }
  0x17   : > { %1656 = vmatprep.subr.bf16.mxu0 %v1774_v3  ;;  %v1805_v32 = vld [vmem:[%s2007_s21 + $0x4] ss:$12 sps:$4 sm:$0xff]  }
  0x18   : > { %988 = vmatprep.mubr.bf16.mxu1 %v1805_v32 }
  0x1a   : > { %1657 = vmatpush3.bf16.msra.mxu0 %v1774_v3 }
  0x1b   : > { %1658 = vmatprep.subr.bf16.mxu0 %v1775_v5 }
  0x1e   : > { %1659 = vmatpush3.bf16.msra.mxu0 %v1775_v5 }
  0x1f   : > { %1660 = vmatprep.subr.bf16.mxu0 %v1776_v6 }
  0x22   : > { %1661 = vmatpush3.bf16.msra.mxu0 %v1776_v6 }
  0x23   : > { %1662 = vmatprep.subr.bf16.mxu0 %v1777_v7 }
  0x26   : > { %1663 = vmatpush3.bf16.msra.mxu0 %v1777_v7 }
  0x27   : > { %1664 = vmatprep.subr.bf16.mxu0 %v1778_v8 }
  0x2a   : > { %1665 = vmatpush3.bf16.msra.mxu0 %v1778_v8 }
  0x2d   : > { %1667 = vmatmul.mubr.bf16.vlgmr.msra.gmra.mxu0 %v1780_v9 }
  0x2e   : > { %1670 = vmatprep.mubr.bf16.mxu0 %v1781_v10 }
  0x35   : > { %1671 = vmatmul.mubr.bf16.gmra.mxu0 %v1782_v11 }
  0x36   : > { %1674 = vmatprep.mubr.bf16.mxu0 %v1783_v12 }
  0x3d   : > { %1675 = vmatmul.mubr.bf16.gmra.mxu0 %v1784_v13 }
  0x3e   : > { %1678 = vmatprep.mubr.bf16.mxu0 %v1785_v14 }
  0x45   : > { %1679 = vmatmul.mubr.bf16.gmra.mxu0 %v1786_v15 }
  0x46   : > { %1682 = vmatprep.mubr.bf16.mxu0 %v1787_v16 }
  0x4d   : > { %1683 = vmatmul.mubr.bf16.gmra.mxu0 %v1788_v17 }
  0x4e   : > { %1686 = vmatprep.mubr.bf16.mxu0 %v1789_v18 }
  0x55   : > { %1687 = vmatmul.mubr.bf16.gmra.mxu0 %v1790_v19 }
  0x56   : > { %1690 = vmatprep.mubr.bf16.mxu0 %v1791_v20 }
  0x5d   : > { %1691 = vmatmul.mubr.bf16.gmra.mxu0 %v1792_v21 }
  0x5e   : > { %1694 = vmatprep.mubr.bf16.mxu0 %v1793_v22 }
  0x65   : > { %1695 = vmatmul.mubr.bf16.gmra.mxu0 %v1794_v23 }
  0x66   : > { %1698 = vmatprep.mubr.bf16.mxu0 %v1795_v24 }
  0x6d   : > { %1699 = vmatmul.mubr.bf16.gmra.mxu0 %v1796_v25 }
  0x6e   : > { %1702 = vmatprep.mubr.bf16.mxu0 %v1797_v26 }
  0x75   : > { %1703 = vmatmul.mubr.bf16.gmra.mxu0 %v1798_v27 }
  0x76   : > { %1706 = vmatprep.mubr.bf16.mxu0 %v1799_v28 }
  0x7d   : > { %1707 = vmatmul.mubr.bf16.gmra.mxu0 %v1800_v29 }
  0x7e   : > { %1710 = vmatprep.mubr.bf16.mxu0 %v1801_v30 }
  0x85   : > { %1711 = vmatmul.mubr.bf16.gmra.mxu0 %v1802_v31  ;;  %v1803_v31 = vld [vmem:[%s2007_s21] ss:$12 sps:$4 sm:$0xff]  }
  0xed   : > { %v2010_v33 = vpop.f32.mrf.mxu0 }
  0xef   : > { %v2012_v34 = vpop.f32.mrf.mxu0 }
  0xf1   : > { %v2014_v35 = vpop.f32.mrf.mxu0 }
  0xf2   : > { %v757_v36 = vpack.c.bf16 %v2014_v35, %v2010_v33  ;;  %v1808_v35 = vld [vmem:[%s2007_s21 + $0x18] ss:$12 sps:$4 sm:$0xff]  }
  0xf3   : > { %v2018_v37 = vpop.f32.mrf.mxu0 }
  0xf4   : > { %v756_v38 = vpack.c.bf16 %v2018_v37, %v2012_v34  ;;  %v1811_v37 = vld [vmem:[%s2007_s21 + $0x30] ss:$12 sps:$4 sm:$0xff]  }
  0xf5   : > { %v1672_v39 = vpop.f32.mrf.mxu0 }
  0xf7   : > { %v581_v40 = vpop.f32.mrf.mxu0 }
  0xf9   : > { %v1673_v41 = vpop.f32.mrf.mxu0 }
  0xfa   : > { %v759_v42 = vpack.c.bf16 %v1673_v41, %v1672_v39  ;;  %v1806_v39 = vld [vmem:[%s2007_s21 + $0x1c] ss:$12 sps:$4 sm:$0xff]  }
  0xfb   : > { %v584_v43 = vpop.f32.mrf.mxu0 }
  0xfc   : > { %v758_v44 = vpack.c.bf16 %v584_v43, %v581_v40 }
  0xfd   : > { %v1676_v45 = vpop.f32.mrf.mxu0 }
  0xff   : > { %v597_v46 = vpop.f32.mrf.mxu0 }
 0x101   : > { %v1677_v47 = vpop.f32.mrf.mxu0 }
 0x102   : > { %v761_v13 = vpack.c.bf16 %v1677_v47, %v1676_v45  ;;  %v1815_v47 = vld [vmem:[%s2007_s21 + $0x64] ss:$12 sps:$4 sm:$0xff]  }
 0x103   : > { %v600_v48 = vpop.f32.mrf.mxu0 }
 0x104   : > { %v760_v17 = vpack.c.bf16 %v600_v48, %v597_v46  ;;  %v1814_v46 = vld [vmem:[%s2007_s21 + $0x48] ss:$12 sps:$4 sm:$0xff]  }
 0x105   : > { %v1680_v49 = vpop.f32.mrf.mxu0 }
 0x107   : > { %v613_v50 = vpop.f32.mrf.mxu0 }
 0x109   : > { %v1681_v51 = vpop.f32.mrf.mxu0 }
 0x10a   : > { %v763_v5 = vpack.c.bf16 %v1681_v51, %v1680_v49  ;;  %v1817_v49 = vld [vmem:[%s2007_s21 + $0x60] ss:$12 sps:$4 sm:$0xff]   ;;  %v1820_v51 = vld [vmem:[%s2007_s21 + $0x78] ss:$12 sps:$4 sm:$0xff]  }
 0x10b   : > { %v616_v52 = vpop.f32.mrf.mxu0 }
 0x10c   : > { %v762_v9 = vpack.c.bf16 %v616_v52, %v613_v50  ;;  %v1818_v50 = vld [vmem:[%s2007_s21 + $0x7c] ss:$12 sps:$4 sm:$0xff]   ;;  %v1821_v52 = vld [vmem:[%s2007_s21 + $0x94] ss:$12 sps:$4 sm:$0xff]  }
 0x10d   : > { %v1684_v53 = vpop.f32.mrf.mxu0 }
 0x10f   : > { %v629_v54 = vpop.f32.mrf.mxu0 }
 0x111   : > { %v1685_v55 = vpop.f32.mrf.mxu0 }
 0x112   : > { %v765_v25 = vpack.c.bf16 %v1685_v55, %v1684_v53  ;;  %v1823_v53 = vld [vmem:[%s2007_s21 + $0x90] ss:$12 sps:$4 sm:$0xff]   ;;  %v1826_v55 = vld [vmem:[%s2007_s21 + $0xa8] ss:$12 sps:$4 sm:$0xff]  }
 0x113   : > { %v632_v56 = vpop.f32.mrf.mxu0 }
 0x114   : > { %v764_v28 = vpack.c.bf16 %v632_v56, %v629_v54  ;;  %v1824_v54 = vld [vmem:[%s2007_s21 + $0xac] ss:$12 sps:$4 sm:$0xff]   ;;  %v1827_v56 = vld [vmem:[%s2007_s21 + $0x8] ss:$12 sps:$4 sm:$0xff]  }
 0x115   : > { %v1688_v57 = vpop.f32.mrf.mxu0 }
 0x117   : > { %v645_v58 = vpop.f32.mrf.mxu0 }
 0x119   : > { %v1689_v59 = vpop.f32.mrf.mxu0 }
 0x11a   : > { %v767_v19 = vpack.c.bf16 %v1689_v59, %v1688_v57  ;;  %v1828_v57 = vld [vmem:[%s2007_s21 + $0x20] ss:$12 sps:$4 sm:$0xff]   ;;  %v1830_v59 = vld [vmem:[%s2007_s21 + $0x50] ss:$12 sps:$4 sm:$0xff]  }
 0x11b   : > { %v648_v60 = vpop.f32.mrf.mxu0 }
 0x11c   : > { %v766_v22 = vpack.c.bf16 %v648_v60, %v645_v58  ;;  %v1829_v58 = vld [vmem:[%s2007_s21 + $0x38] ss:$12 sps:$4 sm:$0xff]   ;;  %v1831_v60 = vld [vmem:[%s2007_s21 + $0x68] ss:$12 sps:$4 sm:$0xff]  }
 0x11d   : > { %v1692_v61 = vpop.f32.mrf.mxu0 }
 0x11f   : > { %v661_v62 = vpop.f32.mrf.mxu0 }
 0x121   : > { %v1693_v63 = vpop.f32.mrf.mxu0 }
 0x122   : > { %v769_v11 = vpack.c.bf16 %v1693_v63, %v1692_v61  ;;  %v1832_v61 = vld [vmem:[%s2007_s21 + $0x80] ss:$12 sps:$4 sm:$0xff]   ;;  %v1834_v63 = vld [vmem:[%s2007_s21 + $0xb0] ss:$12 sps:$4 sm:$0xff]  }
 0x123   : > { %v664_v0 = vpop.f32.mrf.mxu0 }
 0x124   : > { %v768_v15 = vpack.c.bf16 %v664_v0, %v661_v62  ;;  %v1833_v62 = vld [vmem:[%s2007_s21 + $0x98] ss:$12 sps:$4 sm:$0xff]  }
 0x125   : > { %v1696_v1 = vpop.f32.mrf.mxu0 }
 0x127   : > { %v677_v2 = vpop.f32.mrf.mxu0 }
 0x129   : > { %v1697_v3 = vpop.f32.mrf.mxu0 }
 0x12a   : > { %v771_v4 = vpack.c.bf16 %v1697_v3, %v1696_v1 }
 0x12b   : > { %v680_v6 = vpop.f32.mrf.mxu0 }
 0x12c   : > { %v770_v7 = vpack.c.bf16 %v680_v6, %v677_v2  ;;  %1570 = vmatprep.subr.bf16.mxu1 %v771_v4 }
 0x12d   : > { %v2022_v8 = vpop.f32.mrf.mxu0  ;;  %1571 = vmatpush3.bf16.msra.mxu1 %v763_v5 }
 0x12e   : > { %1572 = vmatprep.subr.bf16.mxu1 %v770_v7 }
 0x12f   : > { %v2024_v10 = vpop.f32.mrf.mxu0 }
 0x131   : > { %v2026_v12 = vpop.f32.mrf.mxu0  ;;  %1573 = vmatpush3.bf16.msra.mxu1 %v762_v9 }
 0x132   : > { %1574 = vmatprep.subr.bf16.mxu1 %v769_v11  ;;  %v773_v45 = vpack.c.bf16 %v2026_v12, %v2022_v8 }
 0x133   : > { %v2028_v14 = vpop.f32.mrf.mxu0 }
 0x134   : > { %v772_v48 = vpack.c.bf16 %v2028_v14, %v2024_v10 }
 0x135   : > { %v1704_v16 = vpop.f32.mrf.mxu0  ;;  %1575 = vmatpush3.bf16.msra.mxu1 %v761_v13 }
 0x136   : > { %1576 = vmatprep.subr.bf16.mxu1 %v768_v15 }
 0x137   : > { %v709_v18 = vpop.f32.mrf.mxu0 }
 0x139   : > { %v1705_v20 = vpop.f32.mrf.mxu0  ;;  %1577 = vmatpush3.bf16.msra.mxu1 %v760_v17 }
 0x13a   : > { %1578 = vmatprep.subr.bf16.mxu1 %v767_v19  ;;  %v775_v34 = vpack.c.bf16 %v1705_v20, %v1704_v16 }
 0x13b   : > { %v712_v21 = vpop.f32.mrf.mxu0 }
 0x13d   : > { %v1708_v23 = vpop.f32.mrf.mxu0  ;;  %1579 = vmatpush3.bf16.msra.mxu1 %v759_v42 }
 0x13e   : > { %1580 = vmatprep.subr.bf16.mxu1 %v766_v22 }
 0x13f   : > { %v725_v24 = vpop.f32.mrf.mxu0 }
 0x141   : > { %v1709_v26 = vpop.f32.mrf.mxu0  ;;  %1581 = vmatpush3.bf16.msra.mxu1 %v758_v44  ;;  %v774_v44 = vpack.c.bf16 %v712_v21, %v709_v18 }
 0x142   : > { %1582 = vmatprep.subr.bf16.mxu1 %v765_v25  ;;  %v777_v33 = vpack.c.bf16 %v1709_v26, %v1708_v23 }
 0x143   : > { %v728_v27 = vpop.f32.mrf.mxu0 }
 0x144   : > { %v776_v43 = vpack.c.bf16 %v728_v27, %v725_v24 }
 0x145   : > { %v1712_v29 = vpop.f32.mrf.mxu0  ;;  %1583 = vmatpush3.bf16.msra.mxu1 %v757_v36  ;;  %v1809_v36 = vld [vmem:[%s2007_s21 + $0x34] ss:$12 sps:$4 sm:$0xff]  }
 0x146   : > { %1584 = vmatprep.subr.bf16.mxu1 %v764_v28 }
 0x147   : > { %v741_v30 = vpop.f32.mrf.mxu0 }
 0x149   : > { %v1713_v32 = vpop.f32.mrf.mxu0  ;;  %1585 = vmatpush3.bf16.msra.mxu1 %v756_v38  ;;  %v1812_v38 = vld [vmem:[%s2007_s21 + $0x4c] ss:$12 sps:$4 sm:$0xff]  }
 0x14a   : > { %v779_v40 = vpack.c.bf16 %v1713_v32, %v1712_v29 }
 0x14b   : > { %v744_v41 = vpop.f32.mrf.mxu0 }
 0x14c   : > { %v778_v42 = vpack.c.bf16 %v744_v41, %v741_v30  ;;  %989 = vmatmul.mubr.bf16.vlgmr.msra.gmra.mxu1 %v1803_v31  ;;  %1714 = vmatprep.subr.bf16.mxu1 %v779_v40 }
 0x14d   : > { %1715 = vmatpush3.bf16.msra.mxu1 %v779_v40  ;;  %996 = vmatprep.mubr.bf16.mxu1 %v1806_v39 }
 0x14e   : > { %1716 = vmatprep.subr.bf16.mxu1 %v778_v42 }
 0x151   : > { %1717 = vmatpush3.bf16.msra.mxu1 %v778_v42 }
 0x152   : > { %1718 = vmatprep.subr.bf16.mxu1 %v777_v33 }
 0x154   : > { %997 = vmatmul.mubr.bf16.gmra.mxu1 %v1808_v35  ;;  %v2078_v35 = vld [vmem:[%s2128_s3] ss:$0 sm:$0xff] }
 0x155   : > { %1719 = vmatpush3.bf16.msra.mxu1 %v777_v33  ;;  %1004 = vmatprep.mubr.bf16.mxu1 %v1809_v36 }
 0x156   : > { %1720 = vmatprep.subr.bf16.mxu1 %v776_v43 }
 0x159   : > { %1721 = vmatpush3.bf16.msra.mxu1 %v776_v43 }
 0x15a   : > { %1722 = vmatprep.subr.bf16.mxu1 %v775_v34 }
 0x15c   : > { %1005 = vmatmul.mubr.bf16.gmra.mxu1 %v1811_v37 }
 0x15d   : > { %1723 = vmatpush3.bf16.msra.mxu1 %v775_v34  ;;  %1012 = vmatprep.mubr.bf16.mxu1 %v1812_v38 }
 0x15e   : > { %1724 = vmatprep.subr.bf16.mxu1 %v774_v44 }
 0x161   : > { %1725 = vmatpush3.bf16.msra.mxu1 %v774_v44 }
 0x162   : > { %1726 = vmatprep.subr.bf16.mxu1 %v773_v45 }
 0x164   : > { %1013 = vmatmul.mubr.bf16.gmra.mxu1 %v1814_v46 }
 0x165   : > { %1727 = vmatpush3.bf16.msra.mxu1 %v773_v45  ;;  %1020 = vmatprep.mubr.bf16.mxu1 %v1815_v47 }
 0x166   : > { %1728 = vmatprep.subr.bf16.mxu1 %v772_v48 }
 0x169   : > { %1729 = vmatpush3.bf16.msra.mxu1 %v772_v48 }
 0x16c   : > { %1021 = vmatmul.mubr.bf16.gmra.mxu1 %v1817_v49 }
 0x16d   : > { %1028 = vmatprep.mubr.bf16.mxu1 %v1818_v50 }
 0x174   : > { %1029 = vmatmul.mubr.bf16.gmra.mxu1 %v1820_v51 }
 0x175   : > { %1036 = vmatprep.mubr.bf16.mxu1 %v1821_v52 }
 0x17c   : > { %1037 = vmatmul.mubr.bf16.gmra.mxu1 %v1823_v53 }
 0x17d   : > { %1044 = vmatprep.mubr.bf16.mxu1 %v1824_v54 }
 0x184   : > { %1045 = vmatmul.mubr.bf16.gmra.mxu1 %v1826_v55 }
 0x185   : > { %1730 = vmatprep.mubr.bf16.mxu1 %v1827_v56 }
 0x18c   : > { %1731 = vmatmul.mubr.bf16.vlgmr.msra.gmra.mxu1 %v1828_v57 }
 0x18d   : > { %1734 = vmatprep.mubr.bf16.mxu1 %v1829_v58 }
 0x194   : > { %1735 = vmatmul.mubr.bf16.gmra.mxu1 %v1830_v59 }
 0x195   : > { %1738 = vmatprep.mubr.bf16.mxu1 %v1831_v60 }
 0x19c   : > { %1739 = vmatmul.mubr.bf16.gmra.mxu1 %v1832_v61 }
 0x19d   : > { %1742 = vmatprep.mubr.bf16.mxu1 %v1833_v62 }
 0x1a4   : > { %1743 = vmatmul.mubr.bf16.gmra.mxu1 %v1834_v63 }
 0x20c   : > { %v1586_v0 = vpop.f32.mrf.mxu1 }
 0x20e   : > { %v1587_v1 = vpop.f32.mrf.mxu1 }
 0x20f   : > { %v1588_v2 = vadd.f32 %v1587_v1, %v1586_v0 }
 0x210   : > { %v1589_v3 = vpop.f32.mrf.mxu1 }
 0x212   : > { %v1590_v4 = vpop.f32.mrf.mxu1 }
 0x213   : > { %v1591_v43 = vadd.f32 %v1590_v4, %v1589_v3 }
 0x214   : > { %v1592_v5 = vpop.f32.mrf.mxu1 }
 0x216   : > { %v1593_v6 = vpop.f32.mrf.mxu1 }
 0x217   : > { %v1594_v40 = vadd.f32 %v1593_v6, %v1592_v5 }
 0x218   : > { %v1595_v7 = vpop.f32.mrf.mxu1 }
 0x21a   : > { %v1596_v8 = vpop.f32.mrf.mxu1 }
 0x21b   : > { %v1597_v42 = vadd.f32 %v1596_v8, %v1595_v7 }
 0x21c   : > { %v1598_v9 = vpop.f32.mrf.mxu1 }
 0x21e   : > { %v1599_v10 = vpop.f32.mrf.mxu1 }
 0x21f   : > { %v1600_v53 = vadd.f32 %v1599_v10, %v1598_v9 }
 0x220   : > { %v1601_v11 = vpop.f32.mrf.mxu1 }
 0x222   : > { %v1602_v12 = vpop.f32.mrf.mxu1 }
 0x223   : > { %v1603_v58 = vadd.f32 %v1602_v12, %v1601_v11 }
 0x224   : > { %v1604_v13 = vpop.f32.mrf.mxu1 }
 0x226   : > { %v1605_v14 = vpop.f32.mrf.mxu1 }
 0x227   : > { %v1606_v48 = vadd.f32 %v1605_v14, %v1604_v13 }
 0x228   : > { %v1607_v15 = vpop.f32.mrf.mxu1 }
 0x22a   : > { %v1608_v16 = vpop.f32.mrf.mxu1 }
 0x22b   : > { %v1609_v54 = vadd.f32 %v1608_v16, %v1607_v15 }
 0x22c   : > { %v1610_v17 = vpop.f32.mrf.mxu1 }
 0x22e   : > { %v1611_v18 = vpop.f32.mrf.mxu1 }
 0x22f   : > { %v1612_v7 = vadd.f32 %v1611_v18, %v1610_v17 }
 0x230   : > { %v1613_v19 = vpop.f32.mrf.mxu1 }
 0x232   : > { %v1614_v20 = vpop.f32.mrf.mxu1 }
 0x233   : > { %v1615_v12 = vadd.f32 %v1614_v20, %v1613_v19 }
 0x234   : > { %v1616_v21 = vpop.f32.mrf.mxu1 }
 0x236   : > { %v1617_v22 = vpop.f32.mrf.mxu1 }
 0x238   : > { %v1619_v23 = vpop.f32.mrf.mxu1 }
 0x23a   : > { %v1620_v24 = vpop.f32.mrf.mxu1 }
 0x23b   : > { %v1621_v8 = vadd.f32 %v1620_v24, %v1619_v23 }
 0x23c   : > { %v2063_v25 = vpop.f32.mrf.mxu1 }
 0x23e   : > { %v2065_v26 = vpop.f32.mrf.mxu1 }
 0x23f   : > { %v1624_v19 = vadd.f32 %v2065_v26, %v2063_v25 }
 0x240   : > { %v2067_v27 = vpop.f32.mrf.mxu1 }
 0x242   : > { %v2069_v28 = vpop.f32.mrf.mxu1 }
 0x244   : > { %v1628_v29 = vpop.f32.mrf.mxu1 }
 0x246   : > { %v1629_v30 = vpop.f32.mrf.mxu1 }
 0x248   : > { %v2071_v31 = vpop.f32.mrf.mxu1 }
 0x24a   : > { %v2073_v32 = vpop.f32.mrf.mxu1 }
 0x24b   : > { %v1633_v20 = vadd.f32 %v2073_v32, %v2071_v31 }
 0x24c   : > { %v1732_v39 = vpop.f32.mrf.mxu1 }
 0x24d   : > { %v1096_v33 = vadd.f32 %v1732_v39, %v1594_v40  ;;  %v1630_v40 = vadd.f32 %v1629_v30, %v1628_v29  ;;  %v1627_v29 = vadd.f32 %v2069_v28, %v2067_v27 }
 0x24e   : > { %v1087_v41 = vpop.f32.mrf.mxu1 }
 0x24f   : > { %v1088_v34 = vadd.f32 %v1588_v2, %v1087_v41  ;;  %v1210_v44 = vadd.f32 %v2078_v35, %v1096_v33  ;;  %v1618_v2 = vadd.f32 %v1617_v22, %v1616_v21 }
 0x250   : > { %v1733_v36 = vpop.f32.mrf.mxu1 }
 0x251   : > { %v1099_v37 = vadd.f32 %v1733_v36, %v1597_v42  ;;  %v1208_v49 = vadd.f32 %v2078_v35, %v1088_v34 }
 0x252   : > { %v1090_v38 = vpop.f32.mrf.mxu1 }
 0x253   : > { %v1211_v45 = vadd.f32 %v2078_v35, %v1099_v37  ;;  %v1091_v46 = vadd.f32 %v1591_v43, %v1090_v38 }
 0x254   : > { %v1736_v47 = vpop.f32.mrf.mxu1 }
 0x255   : > { %v1499_v50 = vpack.c.bf16 %v1211_v45, %v1210_v44  ;;  %v1209_v51 = vadd.f32 %v2078_v35, %v1091_v46  ;;  %v1112_v56 = vadd.f32 %v1736_v47, %v1606_v48 }
 0x256   : > { %v1103_v52 = vpop.f32.mrf.mxu1 }
 0x257   : > { %1531 = vst [vmem:[%s2086_s26 + $0x8] sm:$0xff] %v1499_v50   ;;  %v1494_v55 = vpack.c.bf16 %v1209_v51, %v1208_v49  ;;  %v1104_v59 = vadd.f32 %v1600_v53, %v1103_v52  ;;  %v1214_v62 = vadd.f32 %v2078_v35, %v1112_v56 }
 0x258   : > { %v1737_v57 = vpop.f32.mrf.mxu1 }
 0x259   : > { %1495 = vst [vmem:[%s2086_s26] sm:$0xff] %v1494_v55   ;;  %v1115_v60 = vadd.f32 %v1737_v57, %v1609_v54  ;;  %v1212_v3 = vadd.f32 %v2078_v35, %v1104_v59 }
 0x25a   : > { %v1106_v61 = vpop.f32.mrf.mxu1 }
 0x25b   : > { %v1215_v63 = vadd.f32 %v2078_v35, %v1115_v60  ;;  %v1107_v0 = vadd.f32 %v1603_v58, %v1106_v61 }
 0x25c   : > { %v1740_v1 = vpop.f32.mrf.mxu1 }
 0x25d   : > { %v1509_v4 = vpack.c.bf16 %v1215_v63, %v1214_v62  ;;  %v1213_v5 = vadd.f32 %v2078_v35, %v1107_v0  ;;  %v1128_v10 = vadd.f32 %v1740_v1, %v1618_v2 }
 0x25e   : > { %v1119_v6 = vpop.f32.mrf.mxu1 }
 0x25f   : > { %1533 = vst [vmem:[%s2086_s26 + $0x18] sm:$0xff] %v1509_v4   ;;  %v1504_v9 = vpack.c.bf16 %v1213_v5, %v1212_v3  ;;  %v1120_v13 = vadd.f32 %v1612_v7, %v1119_v6  ;;  %v1218_v16 = vadd.f32 %v2078_v35, %v1128_v10 }
 0x260   : > { %v1741_v11 = vpop.f32.mrf.mxu1 }
 0x261   : > { %1532 = vst [vmem:[%s2086_s26 + $0x10] sm:$0xff] %v1504_v9   ;;  %v1131_v14 = vadd.f32 %v1741_v11, %v1621_v8  ;;  %v1216_v17 = vadd.f32 %v2078_v35, %v1120_v13 }
 0x262   : > { %v1122_v15 = vpop.f32.mrf.mxu1 }
 0x263   : > { %v1219_v21 = vadd.f32 %v2078_v35, %v1131_v14  ;;  %v1123_v22 = vadd.f32 %v1615_v12, %v1122_v15 }
 0x264   : > { %v1744_v39 = vpop.f32.mrf.mxu1 }
 0x265   : > { %v1519_v18 = vpack.c.bf16 %v1219_v21, %v1218_v16  ;;  %v1217_v23 = vadd.f32 %v2078_v35, %v1123_v22  ;;  %v1144_v42 = vadd.f32 %v1744_v39, %v1630_v40 }
 0x266   : > { %v1135_v24 = vpop.f32.mrf.mxu1 }
 0x267   : > { %1535 = vst [vmem:[%s2086_s26 + $0x28] sm:$0xff] %v1519_v18   ;;  %v1514_v41 = vpack.c.bf16 %v1217_v23, %v1216_v17  ;;  %v1136_v30 = vadd.f32 %v1624_v19, %v1135_v24  ;;  %v1222_v34 = vadd.f32 %v2078_v35, %v1144_v42 }
 0x268   : > { %v1745_v33 = vpop.f32.mrf.mxu1 }
 0x269   : > { %1534 = vst [vmem:[%s2086_s26 + $0x20] sm:$0xff] %v1514_v41   ;;  %v1147_v36 = vadd.f32 %v1745_v33, %v1633_v20  ;;  %v1220_v31 = vadd.f32 %v2078_v35, %v1136_v30 }
 0x26a   : > { %v1138_v43 = vpop.f32.mrf.mxu1 }
 0x26b   : > { %v1223_v25 = vadd.f32 %v2078_v35, %v1147_v36  ;;  %v1139_v26 = vadd.f32 %v1627_v29, %v1138_v43 }
 0x26d   : > { %v1529_v32 = vpack.c.bf16 %v1223_v25, %v1222_v34  ;;  %v1221_v37 = vadd.f32 %v2078_v35, %v1139_v26 }
 0x26f   : > { %1537 = vst [vmem:[%s2086_s26 + $0x38] sm:$0xff] %v1529_v32   ;;  %v1524_v38 = vpack.c.bf16 %v1221_v37, %v1220_v31 }
 0x271   : > { %1536 = vst [vmem:[%s2086_s26 + $0x30] sm:$0xff] %v1524_v38  }
 0x272 PF: > { %s14_s17 = sadd.s32 1, %s1857_s17   ;;  %s2130_s15 = smov %s1853_s16 }
 0x273   : > { %p11_p5 = scmp.ge.s32.totalorder %s14_s17, 5   ;;  %s2131_s16 = smov %s2133_s18 }
 0x275   :  { %13 = sbr.rel (!%p11_p5) target bundleno = 2 (0x2), region = 77 }

// kernel: gcn_forward.2
= control target key start
LH: loop header
LB: loop body
LE: loop exit
PB: predicated region body
PF: predicated region fallthrough
CT: control target
= control target key end

     0   :  { %s1900_s15 = smov 0   ;;  %s1902_s16 = smov 0   ;;  %s2153_s0 = inlined_call_operand.vmem [shape: bf16[384,384], index: 0, kind: input, shape index: {}]   ;;  %s2154_s1 = inlined_call_operand.vmem [shape: bf16[384,128], index: 1, kind: input, shape index: {}]   ;;  %s2155_s2 = inlined_call_operand.vmem [shape: bf16[128,128], index: 2, kind: input, shape index: {}]   ;;  %s2156_s3 = inlined_call_operand.vmem [shape: f32[1,128], index: 3, kind: input, shape index: {}]   ;;  %s2157_s4 = inlined_call_operand.vmem [shape: bf16[384,128], index: 4, kind: output, shape index: {}]  }
   0x1   :  { %s1904_s17 = smov 0  }
   0x2 LB: > { %s26_s18 = sadd.s32 1, %s1869_s16  ;;  %p1411_p0 = scmp.ge.s32.totalorder %s1873_s17, 1  ;;  %s1873_s17 = sphi %s1904_s17, %s14_s17   ;;  %s1869_s16 = sphi %s1902_s16, %s2159_s16   ;;  %s1865_s15 = sphi %s1900_s15, %s2158_s15  }
   0x3   : > { %p28_p1 = scmp.ge.s32.totalorder %s26_s18, 3  ;;  %p194_p2 = scmp.lt.s32.totalorder %s1873_s17, 4 }
   0x5   : > { %s2161_s18 = smov (%p28_p1, %s26_s18), 0  ;;  %p195_p3 = pnand %p1411_p0, %p194_p2 }
   0x6   : > { %s1412_s13 = sshll.u32 (!%p195_p3), %s1865_s15, 4 }
   0x7   : > { %198 = sbr.rel (%p195_p3) target bundleno = 628 (0x274), region = 36  ;;  %p232_p4 = scmp.lt.s32.totalorder (!%p195_p3), %s1412_s13, 47 }
   0xc   : > { %v1787_v0 = vld [vmem:[%s2155_s2 + $0x38] sm:$0xff]   ;;  %v1788_v1 = vld [vmem:[%s2155_s2 + $0x30] sm:$0xff]   ;;  %v1789_v2 = vld [vmem:[%s2155_s2 + $0x28] sm:$0xff]   ;;  %s2163_s13 = smov (!%p232_p4, %s1412_s13), 47 }
   0xd   : > { %1666 = vmatprep.subr.bf16.mxu0 %v1787_v0  ;;  %v1790_v3 = vld [vmem:[%s2155_s2 + $0x20] sm:$0xff]   ;;  %v1791_v5 = vld [vmem:[%s2155_s2 + $0x18] sm:$0xff]   ;;  %v1792_v6 = vld [vmem:[%s2155_s2 + $0x10] sm:$0xff]   ;;  %s1762_s14 = smul.u32 12, %s2163_s13  ;;  %s1415_s23 = sshll.u32 %s2163_s13, 2 }
   0xe   : > { %1667 = vmatpush3.bf16.msra.mxu0 %v1787_v0  ;;  %v1795_v4 = vld [vmem:[%s2154_s1] sm:$0xff]   ;;  %v1793_v7 = vld [vmem:[%s2155_s2 + $0x8] sm:$0xff]   ;;  %v1797_v10 = vld [vmem:[%s2154_s1 + $0x10] sm:$0xff]   ;;  %s2112_s26 = scalar_lea.vmem %s2157_s4, %s1415_s23 }
   0xf   : > { %1668 = vmatprep.subr.bf16.mxu0 %v1788_v1  ;;  %1682 = vmatprep.mubr.bf16.mxu0 %v1795_v4  ;;  %v1794_v8 = vld [vmem:[%s2155_s2] sm:$0xff]   ;;  %v1796_v9 = vld [vmem:[%s2154_s1 + $0x8] sm:$0xff]   ;;  %v1798_v11 = vld [vmem:[%s2154_s1 + $0x18] sm:$0xff]   ;;  %s2023_s21 = scalar_lea.vmem %s2153_s0, %s1762_s14 }
  0x10   : > { %v1799_v12 = vld [vmem:[%s2154_s1 + $0x20] sm:$0xff]   ;;  %v1800_v13 = vld [vmem:[%s2154_s1 + $0x28] sm:$0xff]   ;;  %v1801_v14 = vld [vmem:[%s2154_s1 + $0x30] sm:$0xff]  }
  0x11   : > { %v1802_v15 = vld [vmem:[%s2154_s1 + $0x38] sm:$0xff]   ;;  %v1803_v16 = vld [vmem:[%s2154_s1 + $0x40] sm:$0xff]   ;;  %v1804_v17 = vld [vmem:[%s2154_s1 + $0x48] sm:$0xff]  }
  0x12   : > { %1669 = vmatpush3.bf16.msra.mxu0 %v1788_v1  ;;  %v1805_v18 = vld [vmem:[%s2154_s1 + $0x50] sm:$0xff]   ;;  %v1806_v19 = vld [vmem:[%s2154_s1 + $0x58] sm:$0xff]   ;;  %v1807_v20 = vld [vmem:[%s2154_s1 + $0x60] sm:$0xff]  }
  0x13   : > { %1670 = vmatprep.subr.bf16.mxu0 %v1789_v2  ;;  %v1808_v21 = vld [vmem:[%s2154_s1 + $0x68] sm:$0xff]   ;;  %v1809_v22 = vld [vmem:[%s2154_s1 + $0x70] sm:$0xff]   ;;  %v1810_v23 = vld [vmem:[%s2154_s1 + $0x78] sm:$0xff]  }
  0x14   : > { %v1811_v24 = vld [vmem:[%s2154_s1 + $0x80] sm:$0xff]   ;;  %v1812_v25 = vld [vmem:[%s2154_s1 + $0x88] sm:$0xff]   ;;  %v1813_v26 = vld [vmem:[%s2154_s1 + $0x90] sm:$0xff]  }
  0x15   : > { %v1814_v27 = vld [vmem:[%s2154_s1 + $0x98] sm:$0xff]   ;;  %v1815_v28 = vld [vmem:[%s2154_s1 + $0xa0] sm:$0xff]   ;;  %v1816_v29 = vld [vmem:[%s2154_s1 + $0xa8] sm:$0xff]  }
  0x16   : > { %1671 = vmatpush3.bf16.msra.mxu0 %v1789_v2  ;;  %v1817_v30 = vld [vmem:[%s2154_s1 + $0xb0] sm:$0xff]   ;;  %v1818_v31 = vld [vmem:[%s2154_s1 + $0xb8] sm:$0xff]  }
  0x17   : > { %1672 = vmatprep.subr.bf16.mxu0 %v1790_v3  ;;  %v1821_v32 = vld [vmem:[%s2023_s21 + $0x4] ss:$12 sps:$4 sm:$0xff]  }
  0x18   : > { %988 = vmatprep.mubr.bf16.mxu1 %v1821_v32 }
  0x1a   : > { %1673 = vmatpush3.bf16.msra.mxu0 %v1790_v3 }
  0x1b   : > { %1674 = vmatprep.subr.bf16.mxu0 %v1791_v5 }
  0x1e   : > { %1675 = vmatpush3.bf16.msra.mxu0 %v1791_v5 }
  0x1f   : > { %1676 = vmatprep.subr.bf16.mxu0 %v1792_v6 }
  0x22   : > { %1677 = vmatpush3.bf16.msra.mxu0 %v1792_v6 }
  0x23   : > { %1678 = vmatprep.subr.bf16.mxu0 %v1793_v7 }
  0x26   : > { %1679 = vmatpush3.bf16.msra.mxu0 %v1793_v7 }
  0x27   : > { %1680 = vmatprep.subr.bf16.mxu0 %v1794_v8 }
  0x2a   : > { %1681 = vmatpush3.bf16.msra.mxu0 %v1794_v8 }
  0x2d   : > { %1683 = vmatmul.mubr.bf16.vlgmr.msra.gmra.mxu0 %v1796_v9 }
  0x2e   : > { %1686 = vmatprep.mubr.bf16.mxu0 %v1797_v10 }
  0x35   : > { %1687 = vmatmul.mubr.bf16.gmra.mxu0 %v1798_v11 }
  0x36   : > { %1690 = vmatprep.mubr.bf16.mxu0 %v1799_v12 }
  0x3d   : > { %1691 = vmatmul.mubr.bf16.gmra.mxu0 %v1800_v13 }
  0x3e   : > { %1694 = vmatprep.mubr.bf16.mxu0 %v1801_v14 }
  0x45   : > { %1695 = vmatmul.mubr.bf16.gmra.mxu0 %v1802_v15 }
  0x46   : > { %1698 = vmatprep.mubr.bf16.mxu0 %v1803_v16 }
  0x4d   : > { %1699 = vmatmul.mubr.bf16.gmra.mxu0 %v1804_v17 }
  0x4e   : > { %1702 = vmatprep.mubr.bf16.mxu0 %v1805_v18 }
  0x55   : > { %1703 = vmatmul.mubr.bf16.gmra.mxu0 %v1806_v19 }
  0x56   : > { %1706 = vmatprep.mubr.bf16.mxu0 %v1807_v20 }
  0x5d   : > { %1707 = vmatmul.mubr.bf16.gmra.mxu0 %v1808_v21 }
  0x5e   : > { %1710 = vmatprep.mubr.bf16.mxu0 %v1809_v22 }
  0x65   : > { %1711 = vmatmul.mubr.bf16.gmra.mxu0 %v1810_v23 }
  0x66   : > { %1714 = vmatprep.mubr.bf16.mxu0 %v1811_v24 }
  0x6d   : > { %1715 = vmatmul.mubr.bf16.gmra.mxu0 %v1812_v25 }
  0x6e   : > { %1718 = vmatprep.mubr.bf16.mxu0 %v1813_v26 }
  0x75   : > { %1719 = vmatmul.mubr.bf16.gmra.mxu0 %v1814_v27 }
  0x76   : > { %1722 = vmatprep.mubr.bf16.mxu0 %v1815_v28 }
  0x7d   : > { %1723 = vmatmul.mubr.bf16.gmra.mxu0 %v1816_v29 }
  0x7e   : > { %1726 = vmatprep.mubr.bf16.mxu0 %v1817_v30 }
  0x85   : > { %1727 = vmatmul.mubr.bf16.gmra.mxu0 %v1818_v31  ;;  %v1819_v31 = vld [vmem:[%s2023_s21] ss:$12 sps:$4 sm:$0xff]  }
  0xed   : > { %v2026_v33 = vpop.f32.mrf.mxu0 }
  0xef   : > { %v2028_v34 = vpop.f32.mrf.mxu0 }
  0xf1   : > { %v2030_v35 = vpop.f32.mrf.mxu0 }
  0xf2   : > { %v757_v36 = vpack.c.bf16 %v2030_v35, %v2026_v33  ;;  %v1824_v35 = vld [vmem:[%s2023_s21 + $0x18] ss:$12 sps:$4 sm:$0xff]  }
  0xf3   : > { %v2034_v37 = vpop.f32.mrf.mxu0 }
  0xf4   : > { %v756_v38 = vpack.c.bf16 %v2034_v37, %v2028_v34  ;;  %v1827_v37 = vld [vmem:[%s2023_s21 + $0x30] ss:$12 sps:$4 sm:$0xff]  }
  0xf5   : > { %v1688_v39 = vpop.f32.mrf.mxu0 }
  0xf7   : > { %v581_v40 = vpop.f32.mrf.mxu0 }
  0xf9   : > { %v1689_v41 = vpop.f32.mrf.mxu0 }
  0xfa   : > { %v759_v42 = vpack.c.bf16 %v1689_v41, %v1688_v39  ;;  %v1822_v39 = vld [vmem:[%s2023_s21 + $0x1c] ss:$12 sps:$4 sm:$0xff]  }
  0xfb   : > { %v584_v43 = vpop.f32.mrf.mxu0 }
  0xfc   : > { %v758_v44 = vpack.c.bf16 %v584_v43, %v581_v40 }
  0xfd   : > { %v1692_v45 = vpop.f32.mrf.mxu0 }
  0xff   : > { %v597_v46 = vpop.f32.mrf.mxu0 }
 0x101   : > { %v1693_v47 = vpop.f32.mrf.mxu0 }
 0x102   : > { %v761_v13 = vpack.c.bf16 %v1693_v47, %v1692_v45  ;;  %v1831_v47 = vld [vmem:[%s2023_s21 + $0x64] ss:$12 sps:$4 sm:$0xff]  }
 0x103   : > { %v600_v48 = vpop.f32.mrf.mxu0 }
 0x104   : > { %v760_v17 = vpack.c.bf16 %v600_v48, %v597_v46  ;;  %v1830_v46 = vld [vmem:[%s2023_s21 + $0x48] ss:$12 sps:$4 sm:$0xff]  }
 0x105   : > { %v1696_v49 = vpop.f32.mrf.mxu0 }
 0x107   : > { %v613_v50 = vpop.f32.mrf.mxu0 }
 0x109   : > { %v1697_v51 = vpop.f32.mrf.mxu0 }
 0x10a   : > { %v763_v5 = vpack.c.bf16 %v1697_v51, %v1696_v49  ;;  %v1833_v49 = vld [vmem:[%s2023_s21 + $0x60] ss:$12 sps:$4 sm:$0xff]   ;;  %v1836_v51 = vld [vmem:[%s2023_s21 + $0x78] ss:$12 sps:$4 sm:$0xff]  }
 0x10b   : > { %v616_v52 = vpop.f32.mrf.mxu0 }
 0x10c   : > { %v762_v9 = vpack.c.bf16 %v616_v52, %v613_v50  ;;  %v1834_v50 = vld [vmem:[%s2023_s21 + $0x7c] ss:$12 sps:$4 sm:$0xff]   ;;  %v1837_v52 = vld [vmem:[%s2023_s21 + $0x94] ss:$12 sps:$4 sm:$0xff]  }
 0x10d   : > { %v1700_v53 = vpop.f32.mrf.mxu0 }
 0x10f   : > { %v629_v54 = vpop.f32.mrf.mxu0 }
 0x111   : > { %v1701_v55 = vpop.f32.mrf.mxu0 }
 0x112   : > { %v765_v25 = vpack.c.bf16 %v1701_v55, %v1700_v53  ;;  %v1839_v53 = vld [vmem:[%s2023_s21 + $0x90] ss:$12 sps:$4 sm:$0xff]   ;;  %v1842_v55 = vld [vmem:[%s2023_s21 + $0xa8] ss:$12 sps:$4 sm:$0xff]  }
 0x113   : > { %v632_v56 = vpop.f32.mrf.mxu0 }
 0x114   : > { %v764_v28 = vpack.c.bf16 %v632_v56, %v629_v54  ;;  %v1840_v54 = vld [vmem:[%s2023_s21 + $0xac] ss:$12 sps:$4 sm:$0xff]   ;;  %v1843_v56 = vld [vmem:[%s2023_s21 + $0x8] ss:$12 sps:$4 sm:$0xff]  }
 0x115   : > { %v1704_v57 = vpop.f32.mrf.mxu0 }
 0x117   : > { %v645_v58 = vpop.f32.mrf.mxu0 }
 0x119   : > { %v1705_v59 = vpop.f32.mrf.mxu0 }
 0x11a   : > { %v767_v19 = vpack.c.bf16 %v1705_v59, %v1704_v57  ;;  %v1844_v57 = vld [vmem:[%s2023_s21 + $0x20] ss:$12 sps:$4 sm:$0xff]   ;;  %v1846_v59 = vld [vmem:[%s2023_s21 + $0x50] ss:$12 sps:$4 sm:$0xff]  }
 0x11b   : > { %v648_v60 = vpop.f32.mrf.mxu0 }
 0x11c   : > { %v766_v22 = vpack.c.bf16 %v648_v60, %v645_v58  ;;  %v1845_v58 = vld [vmem:[%s2023_s21 + $0x38] ss:$12 sps:$4 sm:$0xff]   ;;  %v1847_v60 = vld [vmem:[%s2023_s21 + $0x68] ss:$12 sps:$4 sm:$0xff]  }
 0x11d   : > { %v1708_v61 = vpop.f32.mrf.mxu0 }
 0x11f   : > { %v661_v62 = vpop.f32.mrf.mxu0 }
 0x121   : > { %v1709_v63 = vpop.f32.mrf.mxu0 }
 0x122   : > { %v769_v11 = vpack.c.bf16 %v1709_v63, %v1708_v61  ;;  %v1848_v61 = vld [vmem:[%s2023_s21 + $0x80] ss:$12 sps:$4 sm:$0xff]   ;;  %v1850_v63 = vld [vmem:[%s2023_s21 + $0xb0] ss:$12 sps:$4 sm:$0xff]  }
 0x123   : > { %v664_v0 = vpop.f32.mrf.mxu0 }
 0x124   : > { %v768_v15 = vpack.c.bf16 %v664_v0, %v661_v62  ;;  %v1849_v62 = vld [vmem:[%s2023_s21 + $0x98] ss:$12 sps:$4 sm:$0xff]  }
 0x125   : > { %v1712_v1 = vpop.f32.mrf.mxu0 }
 0x127   : > { %v677_v2 = vpop.f32.mrf.mxu0 }
 0x129   : > { %v1713_v3 = vpop.f32.mrf.mxu0 }
 0x12a   : > { %v771_v4 = vpack.c.bf16 %v1713_v3, %v1712_v1 }
 0x12b   : > { %v680_v6 = vpop.f32.mrf.mxu0 }
 0x12c   : > { %v770_v7 = vpack.c.bf16 %v680_v6, %v677_v2  ;;  %1586 = vmatprep.subr.bf16.mxu1 %v771_v4 }
 0x12d   : > { %v2038_v8 = vpop.f32.mrf.mxu0  ;;  %1587 = vmatpush3.bf16.msra.mxu1 %v763_v5 }
 0x12e   : > { %1588 = vmatprep.subr.bf16.mxu1 %v770_v7 }
 0x12f   : > { %v2040_v10 = vpop.f32.mrf.mxu0 }
 0x131   : > { %v2042_v12 = vpop.f32.mrf.mxu0  ;;  %1589 = vmatpush3.bf16.msra.mxu1 %v762_v9 }
 0x132   : > { %1590 = vmatprep.subr.bf16.mxu1 %v769_v11  ;;  %v773_v45 = vpack.c.bf16 %v2042_v12, %v2038_v8 }
 0x133   : > { %v2044_v14 = vpop.f32.mrf.mxu0 }
 0x134   : > { %v772_v48 = vpack.c.bf16 %v2044_v14, %v2040_v10 }
 0x135   : > { %v1720_v16 = vpop.f32.mrf.mxu0  ;;  %1591 = vmatpush3.bf16.msra.mxu1 %v761_v13 }
 0x136   : > { %1592 = vmatprep.subr.bf16.mxu1 %v768_v15 }
 0x137   : > { %v709_v18 = vpop.f32.mrf.mxu0 }
 0x139   : > { %v1721_v20 = vpop.f32.mrf.mxu0  ;;  %1593 = vmatpush3.bf16.msra.mxu1 %v760_v17 }
 0x13a   : > { %1594 = vmatprep.subr.bf16.mxu1 %v767_v19  ;;  %v775_v34 = vpack.c.bf16 %v1721_v20, %v1720_v16 }
 0x13b   : > { %v712_v21 = vpop.f32.mrf.mxu0 }
 0x13d   : > { %v1724_v23 = vpop.f32.mrf.mxu0  ;;  %1595 = vmatpush3.bf16.msra.mxu1 %v759_v42 }
 0x13e   : > { %1596 = vmatprep.subr.bf16.mxu1 %v766_v22 }
 0x13f   : > { %v725_v24 = vpop.f32.mrf.mxu0 }
 0x141   : > { %v1725_v26 = vpop.f32.mrf.mxu0  ;;  %1597 = vmatpush3.bf16.msra.mxu1 %v758_v44  ;;  %v774_v44 = vpack.c.bf16 %v712_v21, %v709_v18 }
 0x142   : > { %1598 = vmatprep.subr.bf16.mxu1 %v765_v25  ;;  %v777_v33 = vpack.c.bf16 %v1725_v26, %v1724_v23 }
 0x143   : > { %v728_v27 = vpop.f32.mrf.mxu0 }
 0x144   : > { %v776_v43 = vpack.c.bf16 %v728_v27, %v725_v24 }
 0x145   : > { %v1728_v29 = vpop.f32.mrf.mxu0  ;;  %1599 = vmatpush3.bf16.msra.mxu1 %v757_v36  ;;  %v1825_v36 = vld [vmem:[%s2023_s21 + $0x34] ss:$12 sps:$4 sm:$0xff]  }
 0x146   : > { %1600 = vmatprep.subr.bf16.mxu1 %v764_v28 }
 0x147   : > { %v741_v30 = vpop.f32.mrf.mxu0 }
 0x149   : > { %v1729_v32 = vpop.f32.mrf.mxu0  ;;  %1601 = vmatpush3.bf16.msra.mxu1 %v756_v38  ;;  %v1828_v38 = vld [vmem:[%s2023_s21 + $0x4c] ss:$12 sps:$4 sm:$0xff]  }
 0x14a   : > { %v779_v40 = vpack.c.bf16 %v1729_v32, %v1728_v29 }
 0x14b   : > { %v744_v41 = vpop.f32.mrf.mxu0 }
 0x14c   : > { %v778_v42 = vpack.c.bf16 %v744_v41, %v741_v30  ;;  %989 = vmatmul.mubr.bf16.vlgmr.msra.gmra.mxu1 %v1819_v31  ;;  %1730 = vmatprep.subr.bf16.mxu1 %v779_v40 }
 0x14d   : > { %1731 = vmatpush3.bf16.msra.mxu1 %v779_v40  ;;  %996 = vmatprep.mubr.bf16.mxu1 %v1822_v39 }
 0x14e   : > { %1732 = vmatprep.subr.bf16.mxu1 %v778_v42 }
 0x151   : > { %1733 = vmatpush3.bf16.msra.mxu1 %v778_v42  ;;  %v2102_v42 = vld [vmem:[%s2156_s3] ss:$0 sm:$0xff] }
 0x152   : > { %1734 = vmatprep.subr.bf16.mxu1 %v777_v33 }
 0x154   : > { %997 = vmatmul.mubr.bf16.gmra.mxu1 %v1824_v35 }
 0x155   : > { %1735 = vmatpush3.bf16.msra.mxu1 %v777_v33  ;;  %1004 = vmatprep.mubr.bf16.mxu1 %v1825_v36 }
 0x156   : > { %1736 = vmatprep.subr.bf16.mxu1 %v776_v43 }
 0x159   : > { %1737 = vmatpush3.bf16.msra.mxu1 %v776_v43 }
 0x15a   : > { %1738 = vmatprep.subr.bf16.mxu1 %v775_v34 }
 0x15c   : > { %1005 = vmatmul.mubr.bf16.gmra.mxu1 %v1827_v37 }
 0x15d   : > { %1739 = vmatpush3.bf16.msra.mxu1 %v775_v34  ;;  %1012 = vmatprep.mubr.bf16.mxu1 %v1828_v38 }
 0x15e   : > { %1740 = vmatprep.subr.bf16.mxu1 %v774_v44 }
 0x161   : > { %1741 = vmatpush3.bf16.msra.mxu1 %v774_v44 }
 0x162   : > { %1742 = vmatprep.subr.bf16.mxu1 %v773_v45 }
 0x164   : > { %1013 = vmatmul.mubr.bf16.gmra.mxu1 %v1830_v46 }
 0x165   : > { %1743 = vmatpush3.bf16.msra.mxu1 %v773_v45  ;;  %1020 = vmatprep.mubr.bf16.mxu1 %v1831_v47 }
 0x166   : > { %1744 = vmatprep.subr.bf16.mxu1 %v772_v48 }
 0x169   : > { %1745 = vmatpush3.bf16.msra.mxu1 %v772_v48 }
 0x16c   : > { %1021 = vmatmul.mubr.bf16.gmra.mxu1 %v1833_v49 }
 0x16d   : > { %1028 = vmatprep.mubr.bf16.mxu1 %v1834_v50 }
 0x174   : > { %1029 = vmatmul.mubr.bf16.gmra.mxu1 %v1836_v51 }
 0x175   : > { %1036 = vmatprep.mubr.bf16.mxu1 %v1837_v52 }
 0x17c   : > { %1037 = vmatmul.mubr.bf16.gmra.mxu1 %v1839_v53 }
 0x17d   : > { %1044 = vmatprep.mubr.bf16.mxu1 %v1840_v54 }
 0x184   : > { %1045 = vmatmul.mubr.bf16.gmra.mxu1 %v1842_v55 }
 0x185   : > { %1746 = vmatprep.mubr.bf16.mxu1 %v1843_v56 }
 0x18c   : > { %1747 = vmatmul.mubr.bf16.vlgmr.msra.gmra.mxu1 %v1844_v57 }
 0x18d   : > { %1750 = vmatprep.mubr.bf16.mxu1 %v1845_v58 }
 0x194   : > { %1751 = vmatmul.mubr.bf16.gmra.mxu1 %v1846_v59 }
 0x195   : > { %1754 = vmatprep.mubr.bf16.mxu1 %v1847_v60 }
 0x19c   : > { %1755 = vmatmul.mubr.bf16.gmra.mxu1 %v1848_v61 }
 0x19d   : > { %1758 = vmatprep.mubr.bf16.mxu1 %v1849_v62 }
 0x1a4   : > { %1759 = vmatmul.mubr.bf16.gmra.mxu1 %v1850_v63 }
 0x20c   : > { %v1602_v0 = vpop.f32.mrf.mxu1 }
 0x20e   : > { %v1603_v1 = vpop.f32.mrf.mxu1 }
 0x20f   : > { %v1604_v2 = vadd.f32 %v1603_v1, %v1602_v0 }
 0x210   : > { %v1605_v3 = vpop.f32.mrf.mxu1 }
 0x212   : > { %v1606_v4 = vpop.f32.mrf.mxu1 }
 0x213   : > { %v1607_v34 = vadd.f32 %v1606_v4, %v1605_v3 }
 0x214   : > { %v1608_v5 = vpop.f32.mrf.mxu1 }
 0x216   : > { %v1609_v6 = vpop.f32.mrf.mxu1 }
 0x217   : > { %v1610_v39 = vadd.f32 %v1609_v6, %v1608_v5 }
 0x218   : > { %v1611_v7 = vpop.f32.mrf.mxu1 }
 0x21a   : > { %v1612_v8 = vpop.f32.mrf.mxu1 }
 0x21b   : > { %v1613_v35 = vadd.f32 %v1612_v8, %v1611_v7 }
 0x21c   : > { %v1614_v9 = vpop.f32.mrf.mxu1 }
 0x21e   : > { %v1615_v10 = vpop.f32.mrf.mxu1 }
 0x21f   : > { %v1616_v49 = vadd.f32 %v1615_v10, %v1614_v9 }
 0x220   : > { %v1617_v11 = vpop.f32.mrf.mxu1 }
 0x222   : > { %v1618_v12 = vpop.f32.mrf.mxu1 }
 0x223   : > { %v1619_v62 = vadd.f32 %v1618_v12, %v1617_v11 }
 0x224   : > { %v1620_v13 = vpop.f32.mrf.mxu1 }
 0x226   : > { %v1621_v14 = vpop.f32.mrf.mxu1 }
 0x227   : > { %v1622_v45 = vadd.f32 %v1621_v14, %v1620_v13 }
 0x228   : > { %v1623_v15 = vpop.f32.mrf.mxu1 }
 0x22a   : > { %v1624_v16 = vpop.f32.mrf.mxu1 }
 0x22b   : > { %v1625_v55 = vadd.f32 %v1624_v16, %v1623_v15 }
 0x22c   : > { %v1626_v17 = vpop.f32.mrf.mxu1 }
 0x22e   : > { %v1627_v18 = vpop.f32.mrf.mxu1 }
 0x22f   : > { %v1628_v7 = vadd.f32 %v1627_v18, %v1626_v17 }
 0x230   : > { %v2079_v19 = vpop.f32.mrf.mxu1 }
 0x232   : > { %v2081_v20 = vpop.f32.mrf.mxu1 }
 0x234   : > { %v1632_v21 = vpop.f32.mrf.mxu1 }
 0x236   : > { %v1633_v22 = vpop.f32.mrf.mxu1 }
 0x237   : > { %v1634_v3 = vadd.f32 %v1633_v22, %v1632_v21 }
 0x238   : > { %v1635_v23 = vpop.f32.mrf.mxu1 }
 0x23a   : > { %v1636_v24 = vpop.f32.mrf.mxu1 }
 0x23b   : > { %v1637_v13 = vadd.f32 %v1636_v24, %v1635_v23 }
 0x23c   : > { %v2083_v25 = vpop.f32.mrf.mxu1 }
 0x23e   : > { %v2085_v26 = vpop.f32.mrf.mxu1 }
 0x240   : > { %v2087_v27 = vpop.f32.mrf.mxu1 }
 0x242   : > { %v2089_v28 = vpop.f32.mrf.mxu1 }
 0x244   : > { %v2091_v29 = vpop.f32.mrf.mxu1 }
 0x246   : > { %v2093_v30 = vpop.f32.mrf.mxu1 }
 0x248   : > { %v2095_v31 = vpop.f32.mrf.mxu1 }
 0x24a   : > { %v2097_v32 = vpop.f32.mrf.mxu1 }
 0x24c   : > { %v1748_v40 = vpop.f32.mrf.mxu1 }
 0x24d   : > { %v1096_v41 = vadd.f32 %v1748_v40, %v1610_v39  ;;  %v1631_v40 = vadd.f32 %v2081_v20, %v2079_v19 }
 0x24e   : > { %v1087_v33 = vpop.f32.mrf.mxu1 }
 0x24f   : > { %v1088_v36 = vadd.f32 %v1604_v2, %v1087_v33  ;;  %v1210_v37 = vadd.f32 %v2102_v42, %v1096_v41 }
 0x250   : > { %v1749_v43 = vpop.f32.mrf.mxu1 }
 0x251   : > { %v1099_v38 = vadd.f32 %v1749_v43, %v1613_v35  ;;  %v1208_v46 = vadd.f32 %v2102_v42, %v1088_v36  ;;  %v1226_v51 = vmax.f32 %v1210_v37, 0.0  ;;  %v1646_v35 = vadd.f32 %v2093_v30, %v2091_v29 }
 0x252   : > { %v1090_v44 = vpop.f32.mrf.mxu1  ;;  %v1640_v43 = vadd.f32 %v2085_v26, %v2083_v25  ;;  %v1649_v29 = vadd.f32 %v2097_v32, %v2095_v31 }
 0x253   : > { %v1211_v47 = vadd.f32 %v2102_v42, %v1099_v38  ;;  %v1091_v48 = vadd.f32 %v1607_v34, %v1090_v44  ;;  %v1224_v57 = vmax.f32 %v1208_v46, 0.0 }
 0x254   : > { %v1752_v50 = vpop.f32.mrf.mxu1 }
 0x255   : > { %v1227_v52 = vmax.f32 %v1211_v47, 0.0  ;;  %v1209_v53 = vadd.f32 %v2102_v42, %v1091_v48  ;;  %v1112_v54 = vadd.f32 %v1752_v50, %v1622_v45 }
 0x256   : > { %v1103_v56 = vpop.f32.mrf.mxu1 }
 0x257   : > { %v1515_v58 = vpack.c.bf16 %v1227_v52, %v1226_v51  ;;  %v1225_v59 = vmax.f32 %v1209_v53, 0.0  ;;  %v1104_v60 = vadd.f32 %v1616_v49, %v1103_v56  ;;  %v1214_v0 = vadd.f32 %v2102_v42, %v1112_v54 }
 0x258   : > { %v1753_v61 = vpop.f32.mrf.mxu1  ;;  %v1643_v49 = vadd.f32 %v2089_v28, %v2087_v27 }
 0x259   : > { %1547 = vst [vmem:[%s2112_s26 + $0x8] sm:$0xff] %v1515_v58   ;;  %v1510_v63 = vpack.c.bf16 %v1225_v59, %v1224_v57  ;;  %v1115_v1 = vadd.f32 %v1753_v61, %v1625_v55  ;;  %v1212_v4 = vadd.f32 %v2102_v42, %v1104_v60  ;;  %v1230_v9 = vmax.f32 %v1214_v0, 0.0 }
 0x25a   : > { %v1106_v2 = vpop.f32.mrf.mxu1 }
 0x25b   : > { %1511 = vst [vmem:[%s2112_s26] sm:$0xff] %v1510_v63   ;;  %v1215_v5 = vadd.f32 %v2102_v42, %v1115_v1  ;;  %v1107_v6 = vadd.f32 %v1619_v62, %v1106_v2  ;;  %v1228_v15 = vmax.f32 %v1212_v4, 0.0 }
 0x25c   : > { %v1756_v8 = vpop.f32.mrf.mxu1 }
 0x25d   : > { %v1231_v10 = vmax.f32 %v1215_v5, 0.0  ;;  %v1213_v11 = vadd.f32 %v2102_v42, %v1107_v6  ;;  %v1128_v12 = vadd.f32 %v1756_v8, %v1634_v3 }
 0x25e   : > { %v1119_v14 = vpop.f32.mrf.mxu1 }
 0x25f   : > { %v1525_v16 = vpack.c.bf16 %v1231_v10, %v1230_v9  ;;  %v1229_v21 = vmax.f32 %v1213_v11, 0.0  ;;  %v1120_v22 = vadd.f32 %v1628_v7, %v1119_v14  ;;  %v1218_v17 = vadd.f32 %v2102_v42, %v1128_v12 }
 0x260   : > { %v1757_v39 = vpop.f32.mrf.mxu1 }
 0x261   : > { %1549 = vst [vmem:[%s2112_s26 + $0x18] sm:$0xff] %v1525_v16   ;;  %v1520_v41 = vpack.c.bf16 %v1229_v21, %v1228_v15  ;;  %v1131_v18 = vadd.f32 %v1757_v39, %v1637_v13  ;;  %v1216_v23 = vadd.f32 %v2102_v42, %v1120_v22  ;;  %v1234_v20 = vmax.f32 %v1218_v17, 0.0 }
 0x262   : > { %v1122_v33 = vpop.f32.mrf.mxu1 }
 0x263   : > { %1548 = vst [vmem:[%s2112_s26 + $0x10] sm:$0xff] %v1520_v41   ;;  %v1219_v24 = vadd.f32 %v2102_v42, %v1131_v18  ;;  %v1123_v36 = vadd.f32 %v1631_v40, %v1122_v33  ;;  %v1232_v44 = vmax.f32 %v1216_v23, 0.0 }
 0x264   : > { %v1760_v19 = vpop.f32.mrf.mxu1 }
 0x265   : > { %v1235_v34 = vmax.f32 %v1219_v24, 0.0  ;;  %v1217_v37 = vadd.f32 %v2102_v42, %v1123_v36  ;;  %v1144_v38 = vadd.f32 %v1760_v19, %v1646_v35 }
 0x266   : > { %v1135_v30 = vpop.f32.mrf.mxu1 }
 0x267   : > { %v1535_v45 = vpack.c.bf16 %v1235_v34, %v1234_v20  ;;  %v1233_v46 = vmax.f32 %v1217_v37, 0.0  ;;  %v1136_v47 = vadd.f32 %v1640_v43, %v1135_v30  ;;  %v1222_v26 = vadd.f32 %v2102_v42, %v1144_v38 }
 0x268   : > { %v1761_v48 = vpop.f32.mrf.mxu1 }
 0x269   : > { %1551 = vst [vmem:[%s2112_s26 + $0x28] sm:$0xff] %v1535_v45   ;;  %v1530_v25 = vpack.c.bf16 %v1233_v46, %v1232_v44  ;;  %v1147_v50 = vadd.f32 %v1761_v48, %v1649_v29  ;;  %v1220_v31 = vadd.f32 %v2102_v42, %v1136_v47  ;;  %v1238_v53 = vmax.f32 %v1222_v26, 0.0 }
 0x26a   : > { %v1138_v51 = vpop.f32.mrf.mxu1 }
 0x26b   : > { %1550 = vst [vmem:[%s2112_s26 + $0x20] sm:$0xff] %v1530_v25   ;;  %v1223_v32 = vadd.f32 %v2102_v42, %v1147_v50  ;;  %v1139_v52 = vadd.f32 %v1643_v49, %v1138_v51  ;;  %v1236_v56 = vmax.f32 %v1220_v31, 0.0 }
 0x26d   : > { %v1239_v54 = vmax.f32 %v1223_v32, 0.0  ;;  %v1221_v55 = vadd.f32 %v2102_v42, %v1139_v52 }
 0x26f   : > { %v1545_v27 = vpack.c.bf16 %v1239_v54, %v1238_v53  ;;  %v1237_v28 = vmax.f32 %v1221_v55, 0.0 }
 0x271   : > { %1553 = vst [vmem:[%s2112_s26 + $0x38] sm:$0xff] %v1545_v27   ;;  %v1540_v57 = vpack.c.bf16 %v1237_v28, %v1236_v56 }
 0x273   : > { %1552 = vst [vmem:[%s2112_s26 + $0x30] sm:$0xff] %v1540_v57  }
 0x274 PF: > { %s14_s17 = sadd.s32 1, %s1873_s17   ;;  %s2158_s15 = smov %s1869_s16 }
 0x275   : > { %p11_p5 = scmp.ge.s32.totalorder %s14_s17, 5   ;;  %s2159_s16 = smov %s2161_s18 }
 0x277   :  { %13 = sbr.rel (!%p11_p5) target bundleno = 2 (0x2), region = 77 }

</bundles_post_ra>
